<compile_context>
chip_gen: v7x
topology: tpu7x:2x2x1
jax: 0.10.0
libtpu: 0.0.40
codegen_flags: <defaults>
</compile_context>

<pallas_src>
import functools

import jax
import jax.numpy as jnp
from jax.experimental import pallas as pl
from jax.experimental.pallas import tpu as pltpu


CIN_PAD = 16     # pad the 5 input channels up to a bf16 sublane tile (16)
COUT_PAD = 8     # pad the 2 output channels up to a full f32 sublane tile (8)
BIAS_ROWS = 16   # ones-rows block realizing the folded bias (16-aligned)

_TAPS = tuple((dy, dx) for dy in range(3) for dx in range(3))


# ----------------------------------------------------------------------------
# Bilinear warp (matches F.grid_sample(mode='bilinear', padding_mode='border',
# align_corners=True) for the grid built in the reference warp_frame).
# ----------------------------------------------------------------------------
def warp_frame_jax(frame, flow):
    """frame: [B, C, H, W], flow: [B, 2, H, W] -> warped [B, C, H, W]."""
    B, C, H, W = frame.shape
    xx = jnp.linspace(-1.0, 1.0, W, dtype=jnp.float32)
    yy = jnp.linspace(-1.0, 1.0, H, dtype=jnp.float32)
    grid_y, grid_x = jnp.meshgrid(yy, xx, indexing="ij")        # [H, W]

    gx = grid_x[None] + flow[:, 0] / (W / 2.0)                  # [B, H, W]
    gy = grid_y[None] + flow[:, 1] / (H / 2.0)

    ix = (gx + 1.0) * 0.5 * (W - 1)                             # align_corners
    iy = (gy + 1.0) * 0.5 * (H - 1)
    ix = jnp.clip(ix, 0.0, W - 1.0)                             # border pad
    iy = jnp.clip(iy, 0.0, H - 1.0)

    ix0f = jnp.floor(ix)
    iy0f = jnp.floor(iy)
    wx = (ix - ix0f)[..., None]
    wy = (iy - iy0f)[..., None]

    ix0 = jnp.clip(ix0f.astype(jnp.int32), 0, W - 1)
    iy0 = jnp.clip(iy0f.astype(jnp.int32), 0, H - 1)
    ix1 = jnp.clip(ix0 + 1, 0, W - 1)
    iy1 = jnp.clip(iy0 + 1, 0, H - 1)

    frame_nhwc = jnp.transpose(frame, (0, 2, 3, 1))             # [B, H, W, C]

    def gather(fr, iy_, ix_):
        return fr[iy_, ix_]                                     # [H, W, C]

    v00 = jax.vmap(gather)(frame_nhwc, iy0, ix0)
    v01 = jax.vmap(gather)(frame_nhwc, iy0, ix1)
    v10 = jax.vmap(gather)(frame_nhwc, iy1, ix0)
    v11 = jax.vmap(gather)(frame_nhwc, iy1, ix1)

    out = ((1.0 - wy) * (1.0 - wx) * v00 + (1.0 - wy) * wx * v01 +
           wy * (1.0 - wx) * v10 + wy * wx * v11)
    return jnp.transpose(out, (0, 3, 1, 2))                     # [B, C, H, W]


# ----------------------------------------------------------------------------
# pltpu.roll direction probe — cached, trace-safe.
# We need rolled[..., i] == feat[..., (i + off) % N]; the returned sign s
# makes shift = (s * off) % N correct for either roll convention.
# ----------------------------------------------------------------------------
def _roll_probe_kernel(x_ref, o_ref):
    o_ref[...] = pltpu.roll(x_ref[...], 1, 1)


@functools.lru_cache(maxsize=None)
def _roll_shift_sign():
    # ensure_compile_time_eval: the concrete read below also works if the
    # caller is being traced inside an outer jax.jit; lru_cache -> at most one
    # probe compile + device round trip per process.
    with jax.ensure_compile_time_eval():
        x = jnp.tile(jnp.arange(128, dtype=jnp.float32)[None, :], (8, 1))
        y = pl.pallas_call(
            _roll_probe_kernel,
            out_shape=jax.ShapeDtypeStruct((8, 128), jnp.float32))(x)
        # jnp.roll convention: y[0, 1] == x[0, 0] == 0  -> shift = -off
        return -1 if float(y[0, 1]) == 0.0 else +1


# ----------------------------------------------------------------------------
# Fused Pallas kernel: 3x (conv3x3 + LeakyReLU(0.2)) -> conv3x3 -> + flow
# Features are channel-major (C, N) with N = images_per_step * H * W; each
# conv is a single (Cout, 9*Cin+16) @ (9*Cin+16, N) bf16 matmul from an
# aligned im2col scratch (the +16 rows are constant ones carrying the bias).
# ----------------------------------------------------------------------------
def _refine_kernel(x_ref, m_ref, w1_ref, w2_ref, w3_ref, wo_ref,
                   out_ref, rhs_ref, *, W, ch, roll_sign):
    x = x_ref[0]                                     # (CIN_PAD, N) f32
    N = x.shape[1]

    # Constant-ones rows matching the bias columns of the packed weights.
    # Layer-1 ones at rows [9*CIN_PAD, +16); layer-2..4 ones at [9*ch, +16).
    # Later tap builds only write rows [0, 9*ch), so the second block is
    # written once here and stays valid for all remaining layers.
    ones_blk = jnp.ones((BIAS_ROWS, N), jnp.bfloat16)
    rhs_ref[pl.ds(9 * CIN_PAD, BIAS_ROWS), :] = ones_blk
    rhs_ref[pl.ds(9 * ch, BIAS_ROWS), :] = ones_blk

    def build_rhs(feat):
        """feat: (cin, N) f32 -> im2col rows [0, 9*cin) of rhs_ref (bf16).

        Taps are lane-rolls of the channel-major feature map.  Rolls wrap
        across image rows AND across the images folded into the lane dim;
        every wrapped position is a border pixel for that tap and the
        per-pixel mask zeroes it, so folding images into lanes is exact.
        """
        cin = feat.shape[0]
        for t, (dy, dx) in enumerate(_TAPS):
            off = (dy - 1) * W + (dx - 1)
            shift = (roll_sign * off) % N            # static, non-negative
            tap = feat if shift == 0 else pltpu.roll(feat, shift, 1)
            if not (dy == 1 and dx == 1):            # border mask (0/1, f32)
                tap = tap * m_ref[pl.ds(t, 1), :]
            # sublane offsets t*cin are multiples of 16 -> bf16-tile aligned
            rhs_ref[pl.ds(t * cin, cin), :] = tap.astype(jnp.bfloat16)

    def conv3x3(feat, w_ref, relu):
        cin = feat.shape[0]
        build_rhs(feat)
        k = 9 * cin + BIAS_ROWS                      # taps + folded-bias rows
        acc = jnp.dot(w_ref[...], rhs_ref[pl.ds(0, k), :],
                      preferred_element_type=jnp.float32)    # (cout, N) f32
        if relu:
            acc = jnp.where(acc >= 0.0, acc, 0.2 * acc)      # LeakyReLU(0.2)
        return acc

    f = conv3x3(x, w1_ref, True)                     # (ch, N)
    f = conv3x3(f, w2_ref, True)
    f = conv3x3(f, w3_ref, True)
    refinement = conv3x3(f, wo_ref, False)           # (COUT_PAD, N)

    # f32 residual add on the 2 real flow rows only; padded rows are zeroed so
    # the padded output never carries residual-channel garbage.
    row = jax.lax.broadcasted_iota(jnp.int32, refinement.shape, 0)
    out_ref[0] = refinement + jnp.where(row < 2, x[:COUT_PAD, :], 0.0)


def conv_stack_pallas(x, masks, weights, W):
    """x: [G, CIN_PAD, N] f32 (N = images_per_step * H * W, lane-folded)
    -> refined (padded) flow [G, COUT_PAD, N] f32."""
    G, cin_pad, N = x.shape
    assert N % 128 == 0 and cin_pad == CIN_PAD
    w1, w2, w3, wo = weights
    ch = w2.shape[0]
    cout = wo.shape[0]
    assert ch % 16 == 0 and ch >= CIN_PAD
    sign = _roll_shift_sign()

    def full(arr):                    # whole-array block, constant index_map
        return pl.BlockSpec(arr.shape, lambda g, _nd=arr.ndim: (0,) * _nd)

    grid_spec = pltpu.PrefetchScalarGridSpec(
        num_scalar_prefetch=0,
        grid=(G,),
        in_specs=[
            pl.BlockSpec((1, cin_pad, N), lambda g: (g, 0, 0)),
            full(masks),
            full(w1), full(w2), full(w3), full(wo),
        ],
        out_specs=pl.BlockSpec((1, cout, N), lambda g: (g, 0, 0)),
        scratch_shapes=[
            # im2col RHS (+ ones rows for the folded bias), bf16, tile-aligned
            pltpu.VMEM((9 * ch + BIAS_ROWS, N), jnp.bfloat16),
        ],
    )

    return pl.pallas_call(
        functools.partial(_refine_kernel, W=W, ch=ch, roll_sign=sign),
        out_shape=jax.ShapeDtypeStruct((G, cout, N), jnp.float32),
        grid_spec=grid_spec,
        compiler_params=pltpu.CompilerParams(
            dimension_semantics=("parallel",)),
    )(x, masks, w1, w2, w3, wo)


# ----------------------------------------------------------------------------
# Wrapper-side packing (im2col weights with folded bias, border masks)
# ----------------------------------------------------------------------------
def _pack_conv(w, b, cin_pad, cout_pad=None):
    """w: (3,3,cin,cout) HWIO, b: (1,cout) -> (cout_p, 9*cin_pad + BIAS_ROWS)
    bf16 im2col weights; the bias lives in the first extra K column and is
    matched in-kernel by BIAS_ROWS constant-ones rows of the rhs scratch."""
    kh, kw, cin, cout = w.shape
    b = jnp.reshape(b, (-1,)).astype(jnp.float32)
    if cout_pad is not None and cout_pad > cout:
        w = jnp.pad(w, ((0, 0), (0, 0), (0, 0), (0, cout_pad - cout)))
        b = jnp.pad(b, (0, cout_pad - cout))
        cout = cout_pad
    if cin_pad > cin:
        w = jnp.pad(w, ((0, 0), (0, 0), (0, cin_pad - cin), (0, 0)))
    w2 = jnp.transpose(w, (3, 0, 1, 2)).reshape(cout, kh * kw * cin_pad)
    bias_cols = jnp.zeros((cout, BIAS_ROWS), jnp.float32).at[:, 0].set(b)
    return jnp.concatenate([w2, bias_cols], axis=1).astype(jnp.bfloat16)


def _make_tap_masks(H, W, imgs_per_step):
    """(16, imgs_per_step*H*W) f32 validity masks for the 3x3 taps on the
    lane-folded spatial dim (rows 9..15 are alignment padding, never read)."""
    idx = jnp.arange(H * W, dtype=jnp.int32)
    r = idx // W
    c = idx % W
    rows = []
    for dy in range(3):
        for dx in range(3):
            rr = r + (dy - 1)
            cc = c + (dx - 1)
            rows.append((rr >= 0) & (rr < H) & (cc >= 0) & (cc < W))
    m = jnp.stack(rows, axis=0).astype(jnp.float32)           # (9, H*W)
    m = jnp.tile(m, (1, imgs_per_step))                       # (9, N)
    return jnp.pad(m, ((0, 16 - 9), (0, 0)))                  # (16, N)


def _default_grid_steps(B):
    """1 step on single-TC chips (v5e/v6e): whole batch folded into the lane
    dim, no per-step overhead.  >=2 'parallel' steps on multi-TC chips
    (v7x / v3-v4 megacore) so both TensorCores get work."""
    try:
        kind = jax.devices()[0].device_kind.lower()
        n_tc = 2 if any(t in kind for t in ("v3", "v4", "v7")) else 1
    except Exception:
        n_tc = 1
    return n_tc if (B >= n_tc and B % n_tc == 0) else 1


# ----------------------------------------------------------------------------
# Full module forward
# ----------------------------------------------------------------------------
def motion_refine_net(flow, reference, target, params, out_params,
                      grid_steps=None):
    """flow [B,2,H,W], reference/target [B,C,H,W] -> refined flow [B,2,H,W]."""
    B, _, H, W = flow.shape
    HW = H * W
    warped_reference = warp_frame_jax(reference, flow)
    residual = target - warped_reference
    x = jnp.concatenate([flow, residual], axis=1)             # [B, 5, H, W]
    cin = x.shape[1]
    x = x.reshape(B, cin, HW)
    x = jnp.pad(x, ((0, 0), (0, CIN_PAD - cin), (0, 0)))      # [B, 16, HW]

    if grid_steps is None:
        grid_steps = _default_grid_steps(B)
    assert B % grid_steps == 0
    bs = B // grid_steps                                      # images / step
    N = bs * HW
    assert N % 128 == 0, "images_per_step * H * W must be lane-tile aligned"
    # fold bs images into the matmul lane dimension (channel-major slab)
    x = (x.reshape(grid_steps, bs, CIN_PAD, HW)
           .transpose(0, 2, 1, 3).reshape(grid_steps, CIN_PAD, N))

    (w1, b1), (w2, b2), (w3, b3) = params
    wo, bo = out_params
    ch = w1.shape[-1]
    weights = (
        _pack_conv(w1, b1, CIN_PAD),
        _pack_conv(w2, b2, ch),
        _pack_conv(w3, b3, ch),
        _pack_conv(wo, bo, ch, cout_pad=COUT_PAD),
    )
    masks = _make_tap_masks(H, W, bs)                         # (16, N)

    out = conv_stack_pallas(x, masks, weights, W)             # (G, 8, N)
    out = (out.reshape(grid_steps, COUT_PAD, bs, HW)
              .transpose(0, 2, 1, 3).reshape(B, COUT_PAD, HW))
    return out[:, :2, :].reshape(B, 2, H, W)                  # NCHW flow


# ----------------------------------------------------------------------------
# Deterministic parameter init (synthetic; shapes from __init__ defaults)
# ----------------------------------------------------------------------------
def init_params(key, in_ch=5, out_ch=2, layers=3, ch=64):
    params = []
    cin = in_ch
    for _ in range(layers):
        key, kw, kb = jax.random.split(key, 3)
        w = jax.random.normal(kw, (3, 3, cin, ch), jnp.float32) / jnp.sqrt(9.0 * cin)
        b = 0.01 * jax.random.normal(kb, (1, ch), jnp.float32)
        params.append((w, b))
        cin = ch
    key, kw, kb = jax.random.split(key, 3)
    wo = jax.random.normal(kw, (3, 3, ch, out_ch), jnp.float32) / jnp.sqrt(9.0 * ch)
    bo = 0.01 * jax.random.normal(kb, (1, out_ch), jnp.float32)
    return params, (wo, bo)


# ----------------------------------------------------------------------------
# Pure-JAX reference for the conv stack (sanity check of the kernel)
# ----------------------------------------------------------------------------
def conv_stack_ref(x_nhwc, params, out_params):
    def conv(x, w, b):
        y = jax.lax.conv_general_dilated(
            x, w, (1, 1), "SAME",
            dimension_numbers=("NHWC", "HWIO", "NHWC"),
            precision=jax.lax.Precision.HIGHEST)
        return y + b.reshape(1, 1, 1, -1)

    f = x_nhwc
    for (w, b) in params:
        f = conv(f, w, b)
        f = jnp.where(f >= 0.0, f, 0.2 * f)
    wo, bo = out_params
    refinement = conv(f, wo, bo)
    return x_nhwc[..., :2] + refinement


if __name__ == "__main__":
    key = jax.random.PRNGKey(0)
    B, C, H, W = 2, 3, 16, 16                      # input_channels = 2 + 3 = 5
    k1, k2, k3, kp = jax.random.split(key, 4)

    flow = 2.0 * jax.random.normal(k1, (B, 2, H, W), jnp.float32)
    reference = jax.random.normal(k2, (B, C, H, W), jnp.float32)
    target = jax.random.normal(k3, (B, C, H, W), jnp.float32)

    params, out_params = init_params(kp)

    refined = motion_refine_net(flow, reference, target, params, out_params)
    refined = jax.block_until_ready(refined)
    assert refined.shape == (B, 2, H, W)
    assert bool(jnp.all(jnp.isfinite(refined)))

    # cross-check the Pallas conv stack against a pure-JAX (f32) reference;
    # tolerance covers the bf16 MXU inputs / bf16-folded bias.
    warped = warp_frame_jax(reference, flow)
    x_nhwc = jnp.transpose(
        jnp.concatenate([flow, target - warped], axis=1), (0, 2, 3, 1))
    ref_out = jnp.transpose(conv_stack_ref(x_nhwc, params, out_params),
                            (0, 3, 1, 2))
    assert bool(jnp.allclose(refined, ref_out, atol=5e-2, rtol=5e-2)), \
        float(jnp.max(jnp.abs(refined - ref_out)))

    # Explicitly exercise the "whole batch folded into the lane dim" path
    # (grid_steps=1) regardless of device generation: this tests the invariant
    # that cross-image roll wraparound is fully covered by the border masks.
    refined_fold = jax.block_until_ready(
        motion_refine_net(flow, reference, target, params, out_params,
                          grid_steps=1))
    assert bool(jnp.allclose(refined_fold, ref_out, atol=5e-2, rtol=5e-2)), \
        float(jnp.max(jnp.abs(refined_fold - ref_out)))

    print("KERNEL_OK")
</pallas_src>

<mosaic_0001>
module attributes {stable_mosaic.version = 11 : i64} {
  func.func @_roll_probe_kernel(%arg0: memref<8x128xf32, #tpu.memory_space<vmem>>, %arg1: memref<8x128xf32, #tpu.memory_space<vmem>>) attributes {dimension_semantics = [], scalar_prefetch = 0 : i64, scratch_operands = 0 : i64, tpu.core_type = #tpu.core_type<tc>} {
    %c0 = arith.constant 0 : index
    %c0_0 = arith.constant 0 : index
    %0 = vector.load %arg0[%c0, %c0_0] : memref<8x128xf32, #tpu.memory_space<vmem>>, vector<8x128xf32>
    %c1_i32 = arith.constant 1 : i32
    %1 = tpu.dynamic_rotate %0 by %c1_i32 dim 1 : vector<8x128xf32>, i32 -> vector<8x128xf32>
    %c0_1 = arith.constant 0 : index
    %c0_2 = arith.constant 0 : index
    %2 = vector.load %arg1[%c0_1, %c0_2] : memref<8x128xf32, #tpu.memory_space<vmem>>, vector<8x128xf32>
    tpu.vector_store %arg1[%c0_1, %c0_2], %1 {strides = array<i32>} : memref<8x128xf32, #tpu.memory_space<vmem>>, vector<8x128xf32>,
    return
  }
}

</mosaic_0001>

<bundles_post_ra>
// kernel: tpu_custom_call.1
= control target key start
LH: loop header
LB: loop body
LE: loop exit
PB: predicated region body
PF: predicated region fallthrough
CT: control target
= control target key end

     0   :  { %6 = vsyncpa [#allocation3], 0  ;;  %s128_s0 = inlined_call_operand.hbm [shape: f32[8,128], index: 0, kind: input, shape index: {}]   ;;  %s129_s1 = inlined_call_operand.hbm [shape: f32[8,128], index: 1, kind: output, shape index: {}]  }
   0x1   :  { %7 = vsyncpa [#allocation4], 0  ;;  %s91_s6 = smov [#allocation2]   ;;  %s43_s10 = scalar_lea.hbm %s128_s0, 128 }
   0x2   :  { %s14_s7 = sshll.u32 %s91_s6, 4  ;;  %p44_p0 = scmp.ne.s32.totalorder %s128_s0, %s43_s10  ;;  %s15_s7 = int_to_ptr.vmem [resolvable:$true] %s14_s7 }
   0x3   :  { %p47_p1 = scmp.lt.u32.totalorder %s43_s10, %s128_s0 }
   0x5   :  { %p49_p2 = pnand %p47_p1, %p44_p0 }
   0x7   :  { %52 = shalt.err (!%p49_p2)
}
   0x8   :  { %s53_s15 = scalar_lea.vmem %s15_s7, 128  ;;  %p58_p4 = scmp.lt.s32.totalorder %s15_s7, %s15_s7 }
   0x9   :  { %p54_p3 = scmp.ne.s32.totalorder %s15_s7, %s53_s15  ;;  %p59_p5 = scmp.lt.s32.totalorder %s53_s15, %s53_s15 }
   0xb   :  { %p60_p6 = por %p59_p5, %p58_p4 }
   0xd   :  { %p61_p7 = pnand %p60_p6, %p54_p3 }
   0xf   :  { %64 = shalt.err (!%p61_p7)
}
  0x10   :  { %17 = dma.hbm_to_vmem [thread:$0]  %s128_s0, 128, %s15_s7, [#allocation3]  }
  0x11   :  { %87 = dma.done.wait [#allocation3], 128  }
  0x12   :  { %88 = vsyncadd [#allocation3], 4294967168  ;;  %v21_v0 = vld [vmem:[#allocation2] sm:$0xff]  ;;  %s92_s18 = smov 1   ;;  %s93_s19 = smov [#allocation5]  }
  0x13   :  { %22 = vrot.lane.b32.xlu0 %v21_v0, %s92_s18  ;;  %s31_s20 = sshll.u32 %s93_s19, 4  ;;  %s32_s20 = int_to_ptr.vmem [resolvable:$true] %s31_s20 }
  0x14   :  { %s65_s21 = scalar_lea.vmem %s32_s20, 128  ;;  %p70_p9 = scmp.lt.s32.totalorder %s32_s20, %s32_s20 }
  0x15   :  { %p66_p8 = scmp.ne.s32.totalorder %s32_s20, %s65_s21  ;;  %p71_p10 = scmp.lt.s32.totalorder %s65_s21, %s65_s21 }
  0x17   :  { %p72_p11 = por %p71_p10, %p70_p9 }
  0x19   :  { %p73_p12 = pnand %p72_p11, %p66_p8 }
  0x85   :  { %v23_v1 = vpop.permute.xlu0 %22 }
  0x86   :  { %24 = vst [vmem:[#allocation5] sm:$0xff] %v23_v1 }
  0x87   :  { %76 = shalt.err (!%p73_p12)
}
  0x88   :  { %s77_s0 = scalar_lea.hbm %s129_s1, 128 }
  0x89   :  { %p78_p13 = scmp.ne.s32.totalorder %s129_s1, %s77_s0  ;;  %p81_p0 = scmp.lt.u32.totalorder %s77_s0, %s129_s1 }
  0x8b   :  { %p83_p1 = pnand %p81_p0, %p78_p13 }
  0x8d   :  { %86 = shalt.err (!%p83_p1)
}
  0x8e   :  { %34 = dma.vmem_to_hbm [thread:$0]  %s32_s20, 128, %s129_s1, [#allocation4]  }
  0x8f   :  { %89 = dma.done.wait [#allocation4], 128  }
  0x90   :  { %90 = vsyncadd [#allocation4], 4294967168 }
  0x91   :  { %38 = vsyncpa [#allocation3], 1 }
  0x92   :  { %39 = vsyncpa [#allocation4], 1 }

</bundles_post_ra>
